<compile_context>
chip_gen: v7x
topology: tpu7x:2x2x1
jax: 0.10.0
libtpu: 0.0.40
codegen_flags: <defaults>
</compile_context>

<pallas_src>
import jax
import jax.numpy as jnp
from jax.experimental import pallas as pl
from jax.experimental.pallas import tpu as pltpu

IN_DIM = 256          # fixed by the module: x.view(-1, 256)
ID_LABEL_SIZE = 500   # config.id_label_size (synthetic choice for the demo)


def _round_up(x, m):
    return ((x + m - 1) // m) * m


def _itemsize(dtype):
    return jnp.dtype(dtype).itemsize


def _choose_tile(n, tile_rows):
    """Row-tile size: multiple of 8, <= tile_rows, and >= 2 grid steps when
    there is enough work so a 2-TensorCore chip (v7x) shards the grid."""
    tile_rows = max(8, _round_up(int(tile_rows), 8))
    n8 = _round_up(max(n, 1), 8)
    if n8 <= tile_rows:
        if n8 >= 1024:
            # enough rows: split into two blocks so both v7x TCs get work
            return _round_up(pl.cdiv(n8, 2), 8)
        return n8
    return tile_rows


def _face_id_fc_kernel(x_ref, w_ref, b_ref, o_ref):
    # x_ref: (tile, 256)        f32  VMEM
    # w_ref: (256, out_dim)     f32  VMEM (resident: same block every grid step)
    # b_ref: (1, out_dim)       f32  VMEM (resident)
    # o_ref: (tile, out_dim)    f32 (or bf16) VMEM
    acc = jnp.dot(x_ref[...], w_ref[...], preferred_element_type=jnp.float32)
    o_ref[...] = (acc + b_ref[...]).astype(o_ref.dtype)


def face_id_fc_forward(x, w, b, *, tile_rows=2048, out_dtype=jnp.float32):
    """Face_ID_fc forward (eval mode).

    x: any shape whose elements flatten to (-1, 256).
    w: (256, id_label_size)  -- transpose of PyTorch's (out, in) weight.
    b: (id_label_size,)
    Returns (n_rows, id_label_size) in `out_dtype` (default float32; pass
    jnp.bfloat16 to halve output HBM traffic in this mem-bound kernel).
    """
    x2 = x.reshape(-1, IN_DIM)
    n = x2.shape[0]
    out_dim = w.shape[1]

    tile = _choose_tile(n, tile_rows)
    grid = (pl.cdiv(n, tile),)
    b2 = b.reshape(1, out_dim)

    # VMEM budget: double-buffered x / out tiles + resident W / b.
    vmem_bytes = (2 * tile * IN_DIM * _itemsize(x2.dtype)
                  + 2 * tile * out_dim * _itemsize(out_dtype)
                  + 2 * IN_DIM * out_dim * _itemsize(w.dtype)
                  + 2 * out_dim * _itemsize(b.dtype))
    vmem_limit = int(min(96 << 20, max(32 << 20, (vmem_bytes * 3) // 2)))

    cost = pl.CostEstimate(
        flops=2 * n * IN_DIM * out_dim,
        transcendentals=0,
        bytes_accessed=(n * IN_DIM * _itemsize(x2.dtype)      # x read
                        + n * out_dim * _itemsize(out_dtype)  # out write
                        + IN_DIM * out_dim * _itemsize(w.dtype)
                        + out_dim * _itemsize(b.dtype)),
    )

    out = pl.pallas_call(
        _face_id_fc_kernel,
        out_shape=jax.ShapeDtypeStruct((n, out_dim), out_dtype),
        grid_spec=pltpu.PrefetchScalarGridSpec(
            num_scalar_prefetch=0,
            grid=grid,
            in_specs=[
                pl.BlockSpec((tile, IN_DIM), lambda i: (i, 0)),     # x row tile
                pl.BlockSpec((IN_DIM, out_dim), lambda i: (0, 0)),  # W (resident)
                pl.BlockSpec((1, out_dim), lambda i: (0, 0)),       # b (resident)
            ],
            out_specs=pl.BlockSpec((tile, out_dim), lambda i: (i, 0)),
        ),
        compiler_params=pltpu.CompilerParams(
            dimension_semantics=("parallel",),
            vmem_limit_bytes=vmem_limit,
        ),
        cost_estimate=cost,
    )(x2, w, b2)

    return out


def init_params(key, out_dim=ID_LABEL_SIZE):
    """Synthetic params matching nn.Linear(256, out_dim) init.

    PyTorch stores W as (out, in); we keep the transpose (in, out) so the kernel
    computes x @ W directly. Init mimics U(-1/sqrt(fan_in), +1/sqrt(fan_in)).
    """
    k1, k2 = jax.random.split(key)
    bound = 1.0 / jnp.sqrt(jnp.float32(IN_DIM))
    w = jax.random.uniform(k1, (IN_DIM, out_dim), jnp.float32, -bound, bound)
    b = jax.random.uniform(k2, (out_dim,), jnp.float32, -bound, bound)
    return w, b


def _reference_forward(x, w, b):
    # f32 reference: view(-1,256) -> (eval-mode) dropout = identity -> Linear
    x2 = x.reshape(-1, IN_DIM).astype(jnp.float32)
    return x2 @ w + b.reshape(1, -1)


if __name__ == "__main__":
    key = jax.random.PRNGKey(0)
    kx, kx2, kp = jax.random.split(key, 3)

    w, b = init_params(kp)

    # Small input consistent with the module: (batch=2, seq=4, feat=256)
    # forward() flattens it to (8, 256).
    x = jax.random.normal(kx, (2, 4, IN_DIM), jnp.float32)
    out = face_id_fc_forward(x, w, b)
    out = jax.block_until_ready(out)
    ref = _reference_forward(x, w, b)
    assert out.shape == (8, ID_LABEL_SIZE), out.shape
    assert jnp.allclose(out, ref, atol=2e-2, rtol=2e-2), "mismatch vs reference (case 1)"

    # Second case: row count not a multiple of the tile -> exercises the ragged
    # last grid block (300 rows, tile=128 -> grid=(3,), last block masked).
    x_big = jax.random.normal(kx2, (300, IN_DIM), jnp.float32)
    out_big = face_id_fc_forward(x_big, w, b, tile_rows=128)
    out_big = jax.block_until_ready(out_big)
    ref_big = _reference_forward(x_big, w, b)
    assert out_big.shape == (300, ID_LABEL_SIZE), out_big.shape
    assert jnp.allclose(out_big, ref_big, atol=2e-2, rtol=2e-2), "mismatch vs reference (case 2)"

    print("KERNEL_OK")
</pallas_src>

<mosaic_0001>
module attributes {stable_mosaic.version = 11 : i64} {
  func.func @_face_id_fc_kernel(%arg0: i32, %arg1: memref<8x256xf32, #tpu.memory_space<vmem>>, %arg2: memref<256x500xf32, #tpu.memory_space<vmem>>, %arg3: memref<1x500xf32, #tpu.memory_space<vmem>>, %arg4: memref<8x500xf32, #tpu.memory_space<vmem>>) attributes {dimension_semantics = [#tpu.dimension_semantics<parallel>], iteration_bounds = array<i64: 1>, scalar_prefetch = 0 : i64, scratch_operands = 0 : i64, tpu.core_type = #tpu.core_type<tc>, window_params = [{transform_indices = @transform_0, window_bounds = array<i64: 8, 256>}, {pipeline_mode = #tpu.pipeline_mode<synchronous>, transform_indices = @transform_1, window_bounds = array<i64: 256, 500>}, {pipeline_mode = #tpu.pipeline_mode<synchronous>, transform_indices = @transform_2, window_bounds = array<i64: 1, 500>}, {transform_indices = @transform_3, window_bounds = array<i64: 8, 500>}]} {
    %c0 = arith.constant 0 : index
    %c0_0 = arith.constant 0 : index
    %0 = vector.load %arg1[%c0, %c0_0] : memref<8x256xf32, #tpu.memory_space<vmem>>, vector<8x256xf32>
    %c0_1 = arith.constant 0 : index
    %c0_2 = arith.constant 0 : index
    %1 = vector.load %arg2[%c0_1, %c0_2] : memref<256x500xf32, #tpu.memory_space<vmem>>, vector<256x500xf32>
    %cst = arith.constant dense<0.000000e+00> : vector<8x500xf32>
    %2 = tpu.matmul %0, %1, %cst {dimension_numbers = #tpu.dot_dimension_numbers<[1], [0], [0], [1], [0, 0, 1, 1], [], []>} : vector<8x256xf32>, vector<256x500xf32>, vector<8x500xf32> -> vector<8x500xf32>
    %c0_3 = arith.constant 0 : index
    %c0_4 = arith.constant 0 : index
    %3 = vector.load %arg3[%c0_3, %c0_4] : memref<1x500xf32, #tpu.memory_space<vmem>>, vector<1x500xf32>
    %4 = vector.broadcast %3 : vector<1x500xf32> to vector<8x500xf32>
    %5 = arith.addf %2, %4 : vector<8x500xf32>
    %c0_5 = arith.constant 0 : index
    %c0_6 = arith.constant 0 : index
    %6 = vector.load %arg4[%c0_5, %c0_6] : memref<8x500xf32, #tpu.memory_space<vmem>>, vector<8x500xf32>
    tpu.vector_store %arg4[%c0_5, %c0_6], %5 {strides = array<i32>} : memref<8x500xf32, #tpu.memory_space<vmem>>, vector<8x500xf32>,
    return
  }
  func.func @transform_0(%arg0: i32) -> (i32, i32) {
    %c0_i32 = arith.constant 0 : i32
    %c0_i32_0 = arith.constant 0 : i32
    return %arg0, %c0_i32 : i32, i32
  }
  func.func @transform_1(%arg0: i32) -> (i32, i32) {
    %c0_i32 = arith.constant 0 : i32
    %c0_i32_0 = arith.constant 0 : i32
    %c0_i32_1 = arith.constant 0 : i32
    return %c0_i32, %c0_i32_0 : i32, i32
  }
  func.func @transform_2(%arg0: i32) -> (i32, i32) {
    %c0_i32 = arith.constant 0 : i32
    %c0_i32_0 = arith.constant 0 : i32
    %c0_i32_1 = arith.constant 0 : i32
    return %c0_i32, %c0_i32_0 : i32, i32
  }
  func.func @transform_3(%arg0: i32) -> (i32, i32) {
    %c0_i32 = arith.constant 0 : i32
    %c0_i32_0 = arith.constant 0 : i32
    return %arg0, %c0_i32 : i32, i32
  }
}

</mosaic_0001>

<bundles_post_ra>
// kernel: tpu_custom_call.1
= control target key start
LH: loop header
LB: loop body
LE: loop exit
PB: predicated region body
PF: predicated region fallthrough
CT: control target
= control target key end

     0   :  { %s907_s0 = inlined_call_operand.vmem [shape: f32[8,256], index: 0, kind: input, shape index: {}]   ;;  %s908_s1 = inlined_call_operand.vmem [shape: f32[256,500], index: 1, kind: input, shape index: {}]   ;;  %s909_s2 = inlined_call_operand.vmem [shape: f32[1,500], index: 2, kind: input, shape index: {}]   ;;  %s910_s3 = inlined_call_operand.hbm [shape: f32[8,500], index: 3, kind: output, shape index: {}]  }
   0x1   :  { %v18_v0 = vld [vmem:[%s908_s1 + $0x8] sm:$0xff]  ;;  %v20_v2 = vld [vmem:[%s908_s1 + $0x18] sm:$0xff]  ;;  %v17_v5 = vld [vmem:[%s908_s1] sm:$0xff] }
   0x2   :  { %v22_v1 = vld [vmem:[%s908_s1 + $0x28] sm:$0xff]  ;;  %v24_v4 = vld [vmem:[%s908_s1 + $0x38] sm:$0xff]  ;;  %v21_v6 = vld [vmem:[%s908_s1 + $0x20] sm:$0xff] }
   0x3   :  { %v328_v3 = vpack.c.bf16 %v22_v1, %v18_v0  ;;  %v392_v7 = vpack.c.bf16 %v24_v4, %v20_v2  ;;  %v330_v8 = vpack.c.bf16 %v21_v6, %v17_v5  ;;  %v19_v9 = vld [vmem:[%s908_s1 + $0x10] sm:$0xff]  ;;  %v26_v11 = vld [vmem:[%s908_s1 + $0x48] sm:$0xff]  ;;  %v28_v14 = vld [vmem:[%s908_s1 + $0x58] sm:$0xff] }
   0x4   :  { %v23_v10 = vld [vmem:[%s908_s1 + $0x30] sm:$0xff]  ;;  %v30_v13 = vld [vmem:[%s908_s1 + $0x68] sm:$0xff]  ;;  %v32_v15 = vld [vmem:[%s908_s1 + $0x78] sm:$0xff] }
   0x5   :  { %329 = vmatprep.subr.bf16.mxu0 %v328_v3  ;;  %v394_v12 = vpack.c.bf16 %v23_v10, %v19_v9  ;;  %393 = vmatprep.subr.bf16.mxu1 %v392_v7  ;;  %v332_v16 = vpack.c.bf16 %v30_v13, %v26_v11  ;;  %v396_v17 = vpack.c.bf16 %v32_v15, %v28_v14  ;;  %v25_v18 = vld [vmem:[%s908_s1 + $0x40] sm:$0xff]  ;;  %v27_v20 = vld [vmem:[%s908_s1 + $0x50] sm:$0xff]  ;;  %v34_v23 = vld [vmem:[%s908_s1 + $0x88] sm:$0xff] }
   0x6   :  { %331 = vmatpush1.bf16.msra.mxu0 %v330_v8  ;;  %v29_v19 = vld [vmem:[%s908_s1 + $0x60] sm:$0xff]  ;;  %v31_v22 = vld [vmem:[%s908_s1 + $0x70] sm:$0xff]  ;;  %v38_v24 = vld [vmem:[%s908_s1 + $0xa8] sm:$0xff] }
   0x7   :  { %395 = vmatpush1.bf16.msra.mxu1 %v394_v12  ;;  %v334_v21 = vpack.c.bf16 %v29_v19, %v25_v18  ;;  %333 = vmatprep.subr.bf16.mxu0 %v332_v16  ;;  %v398_v25 = vpack.c.bf16 %v31_v22, %v27_v20  ;;  %v336_v26 = vpack.c.bf16 %v38_v24, %v34_v23  ;;  %v36_v27 = vld [vmem:[%s908_s1 + $0x98] sm:$0xff]  ;;  %v33_v29 = vld [vmem:[%s908_s1 + $0x80] sm:$0xff]  ;;  %v35_v32 = vld [vmem:[%s908_s1 + $0x90] sm:$0xff] }
   0x8   :  { %397 = vmatprep.subr.bf16.mxu1 %v396_v17  ;;  %v40_v28 = vld [vmem:[%s908_s1 + $0xb8] sm:$0xff]  ;;  %v37_v31 = vld [vmem:[%s908_s1 + $0xa0] sm:$0xff]  ;;  %v39_v33 = vld [vmem:[%s908_s1 + $0xb0] sm:$0xff] }
   0x9   :  { %v400_v30 = vpack.c.bf16 %v40_v28, %v36_v27  ;;  %v338_v34 = vpack.c.bf16 %v37_v31, %v33_v29  ;;  %v42_v35 = vld [vmem:[%s908_s1 + $0xc8] sm:$0xff]  ;;  %v44_v37 = vld [vmem:[%s908_s1 + $0xd8] sm:$0xff]  ;;  %v402_v38 = vpack.c.bf16 %v39_v33, %v35_v32  ;;  %v41_v41 = vld [vmem:[%s908_s1 + $0xc0] sm:$0xff] }
   0xa   :  { %335 = vmatpush1.bf16.msra.mxu0 %v334_v21  ;;  %v46_v36 = vld [vmem:[%s908_s1 + $0xe8] sm:$0xff]  ;;  %v48_v40 = vld [vmem:[%s908_s1 + $0xf8] sm:$0xff]  ;;  %v45_v42 = vld [vmem:[%s908_s1 + $0xe0] sm:$0xff] }
   0xb   :  { %399 = vmatpush1.bf16.msra.mxu1 %v398_v25  ;;  %337 = vmatprep.subr.bf16.mxu0 %v336_v26  ;;  %v340_v39 = vpack.c.bf16 %v46_v36, %v42_v35  ;;  %v404_v43 = vpack.c.bf16 %v48_v40, %v44_v37  ;;  %v43_v44 = vld [vmem:[%s908_s1 + $0xd0] sm:$0xff]  ;;  %v50_v46 = vld [vmem:[%s908_s1 + $0x108] sm:$0xff]  ;;  %v52_v48 = vld [vmem:[%s908_s1 + $0x118] sm:$0xff]  ;;  %v342_v50 = vpack.c.bf16 %v45_v42, %v41_v41 }
   0xc   :  { %401 = vmatprep.subr.bf16.mxu1 %v400_v30  ;;  %v47_v45 = vld [vmem:[%s908_s1 + $0xf0] sm:$0xff]  ;;  %v54_v47 = vld [vmem:[%s908_s1 + $0x128] sm:$0xff]  ;;  %v56_v49 = vld [vmem:[%s908_s1 + $0x138] sm:$0xff] }
   0xd   :  { %v406_v51 = vpack.c.bf16 %v47_v45, %v43_v44  ;;  %v344_v52 = vpack.c.bf16 %v54_v47, %v50_v46  ;;  %v49_v53 = vld [vmem:[%s908_s1 + $0x100] sm:$0xff]  ;;  %v51_v55 = vld [vmem:[%s908_s1 + $0x110] sm:$0xff]  ;;  %v408_v56 = vpack.c.bf16 %v56_v49, %v52_v48  ;;  %v58_v58 = vld [vmem:[%s908_s1 + $0x148] sm:$0xff] }
   0xe   :  { %339 = vmatpush1.bf16.msra.mxu0 %v338_v34  ;;  %v53_v54 = vld [vmem:[%s908_s1 + $0x120] sm:$0xff]  ;;  %v55_v57 = vld [vmem:[%s908_s1 + $0x130] sm:$0xff]  ;;  %v62_v59 = vld [vmem:[%s908_s1 + $0x168] sm:$0xff] }
   0xf   :  { %403 = vmatpush1.bf16.msra.mxu1 %v402_v38  ;;  %341 = vmatprep.subr.bf16.mxu0 %v340_v39  ;;  %v60_v60 = vld [vmem:[%s908_s1 + $0x158] sm:$0xff]  ;;  %v346_v62 = vpack.c.bf16 %v53_v54, %v49_v53  ;;  %v410_v63 = vpack.c.bf16 %v55_v57, %v51_v55  ;;  %v348_v0 = vpack.c.bf16 %v62_v59, %v58_v58  ;;  %v57_v1 = vld [vmem:[%s908_s1 + $0x140] sm:$0xff]  ;;  %v59_v3 = vld [vmem:[%s908_s1 + $0x150] sm:$0xff] }
  0x10   :  { %405 = vmatprep.subr.bf16.mxu1 %v404_v43  ;;  %v64_v61 = vld [vmem:[%s908_s1 + $0x178] sm:$0xff]  ;;  %v61_v2 = vld [vmem:[%s908_s1 + $0x160] sm:$0xff]  ;;  %v63_v5 = vld [vmem:[%s908_s1 + $0x170] sm:$0xff] }
  0x11   :  { %v412_v4 = vpack.c.bf16 %v64_v61, %v60_v60  ;;  %v66_v6 = vld [vmem:[%s908_s1 + $0x188] sm:$0xff]  ;;  %v68_v8 = vld [vmem:[%s908_s1 + $0x198] sm:$0xff]  ;;  %v350_v10 = vpack.c.bf16 %v61_v2, %v57_v1  ;;  %v414_v11 = vpack.c.bf16 %v63_v5, %v59_v3  ;;  %v65_v13 = vld [vmem:[%s908_s1 + $0x180] sm:$0xff] }
  0x12   :  { %343 = vmatpush1.bf16.msra.mxu0 %v342_v50  ;;  %v70_v7 = vld [vmem:[%s908_s1 + $0x1a8] sm:$0xff]  ;;  %v72_v9 = vld [vmem:[%s908_s1 + $0x1b8] sm:$0xff]  ;;  %v69_v14 = vld [vmem:[%s908_s1 + $0x1a0] sm:$0xff] }
  0x13   :  { %407 = vmatpush1.bf16.msra.mxu1 %v406_v51  ;;  %345 = vmatprep.subr.bf16.mxu0 %v344_v52  ;;  %v352_v12 = vpack.c.bf16 %v70_v7, %v66_v6  ;;  %v67_v15 = vld [vmem:[%s908_s1 + $0x190] sm:$0xff]  ;;  %v416_v16 = vpack.c.bf16 %v72_v9, %v68_v8  ;;  %v74_v18 = vld [vmem:[%s908_s1 + $0x1c8] sm:$0xff]  ;;  %v76_v20 = vld [vmem:[%s908_s1 + $0x1d8] sm:$0xff]  ;;  %v354_v22 = vpack.c.bf16 %v69_v14, %v65_v13 }
  0x14   :  { %409 = vmatprep.subr.bf16.mxu1 %v408_v56  ;;  %v71_v17 = vld [vmem:[%s908_s1 + $0x1b0] sm:$0xff]  ;;  %v78_v19 = vld [vmem:[%s908_s1 + $0x1e8] sm:$0xff]  ;;  %v80_v21 = vld [vmem:[%s908_s1 + $0x1f8] sm:$0xff] }
  0x15   :  { %v418_v23 = vpack.c.bf16 %v71_v17, %v67_v15  ;;  %v356_v24 = vpack.c.bf16 %v78_v19, %v74_v18  ;;  %v73_v25 = vld [vmem:[%s908_s1 + $0x1c0] sm:$0xff]  ;;  %v75_v27 = vld [vmem:[%s908_s1 + $0x1d0] sm:$0xff]  ;;  %v420_v28 = vpack.c.bf16 %v80_v21, %v76_v20  ;;  %v82_v30 = vld [vmem:[%s908_s1 + $0x208] sm:$0xff] }
  0x16   :  { %347 = vmatpush1.bf16.msra.mxu0 %v346_v62  ;;  %v77_v26 = vld [vmem:[%s908_s1 + $0x1e0] sm:$0xff]  ;;  %v79_v29 = vld [vmem:[%s908_s1 + $0x1f0] sm:$0xff]  ;;  %v86_v31 = vld [vmem:[%s908_s1 + $0x228] sm:$0xff] }
  0x17   :  { %411 = vmatpush1.bf16.msra.mxu1 %v410_v63  ;;  %349 = vmatprep.subr.bf16.mxu0 %v348_v0  ;;  %v84_v32 = vld [vmem:[%s908_s1 + $0x218] sm:$0xff]  ;;  %v358_v34 = vpack.c.bf16 %v77_v26, %v73_v25  ;;  %v422_v35 = vpack.c.bf16 %v79_v29, %v75_v27  ;;  %v360_v36 = vpack.c.bf16 %v86_v31, %v82_v30  ;;  %v81_v37 = vld [vmem:[%s908_s1 + $0x200] sm:$0xff]  ;;  %v83_v39 = vld [vmem:[%s908_s1 + $0x210] sm:$0xff] }
  0x18   :  { %413 = vmatprep.subr.bf16.mxu1 %v412_v4  ;;  %v88_v33 = vld [vmem:[%s908_s1 + $0x238] sm:$0xff]  ;;  %v85_v38 = vld [vmem:[%s908_s1 + $0x220] sm:$0xff]  ;;  %v87_v41 = vld [vmem:[%s908_s1 + $0x230] sm:$0xff] }
  0x19   :  { %v424_v40 = vpack.c.bf16 %v88_v33, %v84_v32  ;;  %v90_v42 = vld [vmem:[%s908_s1 + $0x248] sm:$0xff]  ;;  %v92_v44 = vld [vmem:[%s908_s1 + $0x258] sm:$0xff]  ;;  %v362_v46 = vpack.c.bf16 %v85_v38, %v81_v37  ;;  %v426_v47 = vpack.c.bf16 %v87_v41, %v83_v39  ;;  %v89_v49 = vld [vmem:[%s908_s1 + $0x240] sm:$0xff] }
  0x1a   :  { %351 = vmatpush1.bf16.msra.mxu0 %v350_v10  ;;  %v94_v43 = vld [vmem:[%s908_s1 + $0x268] sm:$0xff]  ;;  %v96_v45 = vld [vmem:[%s908_s1 + $0x278] sm:$0xff]  ;;  %v93_v50 = vld [vmem:[%s908_s1 + $0x260] sm:$0xff] }
  0x1b   :  { %415 = vmatpush1.bf16.msra.mxu1 %v414_v11  ;;  %353 = vmatprep.subr.bf16.mxu0 %v352_v12  ;;  %v364_v48 = vpack.c.bf16 %v94_v43, %v90_v42  ;;  %v91_v51 = vld [vmem:[%s908_s1 + $0x250] sm:$0xff]  ;;  %v428_v52 = vpack.c.bf16 %v96_v45, %v92_v44  ;;  %v98_v54 = vld [vmem:[%s908_s1 + $0x288] sm:$0xff]  ;;  %v100_v56 = vld [vmem:[%s908_s1 + $0x298] sm:$0xff]  ;;  %v366_v58 = vpack.c.bf16 %v93_v50, %v89_v49 }
  0x1c   :  { %417 = vmatprep.subr.bf16.mxu1 %v416_v16  ;;  %v95_v53 = vld [vmem:[%s908_s1 + $0x270] sm:$0xff]  ;;  %v102_v55 = vld [vmem:[%s908_s1 + $0x2a8] sm:$0xff]  ;;  %v104_v57 = vld [vmem:[%s908_s1 + $0x2b8] sm:$0xff] }
  0x1d   :  { %v430_v59 = vpack.c.bf16 %v95_v53, %v91_v51  ;;  %v368_v60 = vpack.c.bf16 %v102_v55, %v98_v54  ;;  %v97_v61 = vld [vmem:[%s908_s1 + $0x280] sm:$0xff]  ;;  %v99_v63 = vld [vmem:[%s908_s1 + $0x290] sm:$0xff]  ;;  %v432_v0 = vpack.c.bf16 %v104_v57, %v100_v56  ;;  %v106_v2 = vld [vmem:[%s908_s1 + $0x2c8] sm:$0xff] }
  0x1e   :  { %355 = vmatpush1.bf16.msra.mxu0 %v354_v22  ;;  %v101_v62 = vld [vmem:[%s908_s1 + $0x2a0] sm:$0xff]  ;;  %v103_v1 = vld [vmem:[%s908_s1 + $0x2b0] sm:$0xff]  ;;  %v110_v3 = vld [vmem:[%s908_s1 + $0x2e8] sm:$0xff] }
  0x1f   :  { %419 = vmatpush1.bf16.msra.mxu1 %v418_v23  ;;  %357 = vmatprep.subr.bf16.mxu0 %v356_v24  ;;  %v108_v4 = vld [vmem:[%s908_s1 + $0x2d8] sm:$0xff]  ;;  %v370_v6 = vpack.c.bf16 %v101_v62, %v97_v61  ;;  %v105_v7 = vld [vmem:[%s908_s1 + $0x2c0] sm:$0xff]  ;;  %v434_v8 = vpack.c.bf16 %v103_v1, %v99_v63  ;;  %v372_v9 = vpack.c.bf16 %v110_v3, %v106_v2  ;;  %v107_v11 = vld [vmem:[%s908_s1 + $0x2d0] sm:$0xff] }
  0x20   :  { %421 = vmatprep.subr.bf16.mxu1 %v420_v28  ;;  %v112_v5 = vld [vmem:[%s908_s1 + $0x2f8] sm:$0xff]  ;;  %v109_v10 = vld [vmem:[%s908_s1 + $0x2e0] sm:$0xff]  ;;  %v111_v12 = vld [vmem:[%s908_s1 + $0x2f0] sm:$0xff] }
  0x21   :  { %v436_v13 = vpack.c.bf16 %v112_v5, %v108_v4  ;;  %v114_v14 = vld [vmem:[%s908_s1 + $0x308] sm:$0xff]  ;;  %v116_v17 = vld [vmem:[%s908_s1 + $0x318] sm:$0xff] }
  0x22   :  { %359 = vmatpush1.bf16.msra.mxu0 %v358_v34  ;;  %v118_v15 = vld [vmem:[%s908_s1 + $0x328] sm:$0xff]  ;;  %v120_v18 = vld [vmem:[%s908_s1 + $0x338] sm:$0xff] }
  0x23   :  { %423 = vmatpush1.bf16.msra.mxu1 %v422_v35  ;;  %361 = vmatprep.subr.bf16.mxu0 %v360_v36  ;;  %v16_v16 = vld [vmem:[%s907_s0 + $0x8] sm:$0xff] }
  0x24   :  { %425 = vmatprep.subr.bf16.mxu1 %v424_v40  ;;  %231 = vmatprep.mubr.f32.mxu0 %v16_v16 }
  0x25   :  { %302 = vmatprep.mubr.f32.mxu1 %v16_v16 }
  0x26   :  { %363 = vmatpush1.bf16.msra.mxu0 %v362_v46 }
  0x27   :  { %427 = vmatpush1.bf16.msra.mxu1 %v426_v47  ;;  %365 = vmatprep.subr.bf16.mxu0 %v364_v48 }
  0x28   :  { %429 = vmatprep.subr.bf16.mxu1 %v428_v52 }
  0x2a   :  { %367 = vmatpush1.bf16.msra.mxu0 %v366_v58 }
  0x2b   :  { %431 = vmatpush1.bf16.msra.mxu1 %v430_v59  ;;  %369 = vmatprep.subr.bf16.mxu0 %v368_v60 }
  0x2c   :  { %433 = vmatprep.subr.bf16.mxu1 %v432_v0 }
  0x2d   :  { %8 = vsyncpa [#allocation3], 0  ;;  %v374_v19 = vpack.c.bf16 %v109_v10, %v105_v7  ;;  %v438_v20 = vpack.c.bf16 %v111_v12, %v107_v11  ;;  %v376_v21 = vpack.c.bf16 %v118_v15, %v114_v14  ;;  %v113_v22 = vld [vmem:[%s908_s1 + $0x300] sm:$0xff]  ;;  %v115_v24 = vld [vmem:[%s908_s1 + $0x310] sm:$0xff]  ;;  %v440_v25 = vpack.c.bf16 %v120_v18, %v116_v17 }
  0x2e   :  { %371 = vmatpush1.bf16.msra.mxu0 %v370_v6  ;;  %v117_v23 = vld [vmem:[%s908_s1 + $0x320] sm:$0xff]  ;;  %v119_v26 = vld [vmem:[%s908_s1 + $0x330] sm:$0xff]  ;;  %v122_v27 = vld [vmem:[%s908_s1 + $0x348] sm:$0xff]  ;;  %v147_v2 = vlaneseq  ;;  %vm312_vm0 = vcmask 949248  }
  0x2f   :  { %435 = vmatpush1.bf16.msra.mxu1 %v434_v8  ;;  %373 = vmatprep.subr.bf16.mxu0 %v372_v9  ;;  %v126_v28 = vld [vmem:[%s908_s1 + $0x368] sm:$0xff]  ;;  %v124_v29 = vld [vmem:[%s908_s1 + $0x358] sm:$0xff]  ;;  %v378_v31 = vpack.c.bf16 %v117_v23, %v113_v22  ;;  %v442_v32 = vpack.c.bf16 %v119_v26, %v115_v24  ;;  %v121_v34 = vld [vmem:[%s908_s1 + $0x340] sm:$0xff] }
  0x30   :  { %437 = vmatprep.subr.bf16.mxu1 %v436_v13  ;;  %v128_v30 = vld [vmem:[%s908_s1 + $0x378] sm:$0xff]  ;;  %v380_v33 = vpack.c.bf16 %v126_v28, %v122_v27  ;;  %v125_v35 = vld [vmem:[%s908_s1 + $0x360] sm:$0xff]  ;;  %v123_v36 = vld [vmem:[%s908_s1 + $0x350] sm:$0xff]  ;;  %v148_v3 = vshrl.u32 %v147_v2, 7 }
  0x31   :  { %v444_v37 = vpack.c.bf16 %v128_v30, %v124_v29  ;;  %v127_v38 = vld [vmem:[%s908_s1 + $0x370] sm:$0xff]  ;;  %v130_v39 = vld [vmem:[%s908_s1 + $0x388] sm:$0xff]  ;;  %v132_v41 = vld [vmem:[%s908_s1 + $0x398] sm:$0xff]  ;;  %v382_v43 = vpack.c.bf16 %v125_v35, %v121_v34 }
  0x32   :  { %375 = vmatpush1.bf16.msra.mxu0 %v374_v19  ;;  %v134_v40 = vld [vmem:[%s908_s1 + $0x3a8] sm:$0xff]  ;;  %v136_v42 = vld [vmem:[%s908_s1 + $0x3b8] sm:$0xff]  ;;  %v446_v44 = vpack.c.bf16 %v127_v38, %v123_v36  ;;  %v129_v46 = vld [vmem:[%s908_s1 + $0x380] sm:$0xff]  ;;  %v149_v4 = vsub.s32 0, %v148_v3  ;;  %v157_v6 = vsub.s32 2, %v148_v3  ;;  %v153_v7 = vsub.s32 1, %v148_v3 }
  0x33   :  { %439 = vmatpush1.bf16.msra.mxu1 %v438_v20  ;;  %377 = vmatprep.subr.bf16.mxu0 %v376_v21  ;;  %v384_v45 = vpack.c.bf16 %v134_v40, %v130_v39  ;;  %v133_v47 = vld [vmem:[%s908_s1 + $0x3a0] sm:$0xff]  ;;  %v131_v48 = vld [vmem:[%s908_s1 + $0x390] sm:$0xff]  ;;  %v448_v49 = vpack.c.bf16 %v136_v42, %v132_v41  ;;  %v138_v51 = vld [vmem:[%s908_s1 + $0x3c8] sm:$0xff]  ;;  %v161_v8 = vsub.s32 3, %v148_v3 }
  0x34   :  { %441 = vmatprep.subr.bf16.mxu1 %v440_v25  ;;  %v135_v50 = vld [vmem:[%s908_s1 + $0x3b0] sm:$0xff]  ;;  %v142_v52 = vld [vmem:[%s908_s1 + $0x3e8] sm:$0xff]  ;;  %v140_v53 = vld [vmem:[%s908_s1 + $0x3d8] sm:$0xff]  ;;  %v386_v55 = vpack.c.bf16 %v133_v47, %v129_v46 }
  0x35   :  { %v144_v54 = vld [vmem:[%s908_s1 + $0x3f8] sm:$0xff]  ;;  %v450_v56 = vpack.c.bf16 %v135_v50, %v131_v48  ;;  %v388_v57 = vpack.c.bf16 %v142_v52, %v138_v51  ;;  %v137_v58 = vld [vmem:[%s908_s1 + $0x3c0] sm:$0xff]  ;;  %v139_v61 = vld [vmem:[%s908_s1 + $0x3d0] sm:$0xff] }
  0x36   :  { %379 = vmatpush1.bf16.msra.mxu0 %v378_v31  ;;  %v141_v59 = vld [vmem:[%s908_s1 + $0x3e0] sm:$0xff]  ;;  %v452_v60 = vpack.c.bf16 %v144_v54, %v140_v53  ;;  %v143_v62 = vld [vmem:[%s908_s1 + $0x3f0] sm:$0xff]  ;;  %s481_s1 = smov [#allocation2]  }
  0x37   :  { %443 = vmatpush1.bf16.msra.mxu1 %v442_v32  ;;  %381 = vmatprep.subr.bf16.mxu0 %v380_v33  ;;  %v390_v63 = vpack.c.bf16 %v141_v59, %v137_v58  ;;  %v454_v0 = vpack.c.bf16 %v143_v62, %v139_v61  ;;  %v15_v1 = vld [vmem:[%s907_s0] sm:$0xff]  ;;  %s320_s0 = sshll.u32 %s481_s1, 4  ;;  %s321_s0 = int_to_ptr.vmem [resolvable:$true] %s320_s0 }
  0x38   :  { %445 = vmatprep.subr.bf16.mxu1 %v444_v37  ;;  %v145_v5 = vld [vmem:[%s909_s2] sm:$0xf]  ;;  %s457_s2 = scalar_lea.vmem %s321_s0, 512  ;;  %p462_p1 = scmp.lt.s32.totalorder %s321_s0, %s321_s0 }
  0x39   :  { %v150_v9 = vrot.slane %v145_v5, %v149_v4  ;;  %v158_v10 = vrot.slane %v145_v5, %v157_v6  ;;  %v154_v11 = vrot.slane %v145_v5, %v153_v7  ;;  %v162_v12 = vrot.slane %v145_v5, %v161_v8  ;;  %p458_p0 = scmp.ne.s32.totalorder %s321_s0, %s457_s2  ;;  %p463_p2 = scmp.lt.s32.totalorder %s457_s2, %s457_s2 }
  0x3a   :  { %383 = vmatpush1.bf16.msra.mxu0 %v382_v43 }
  0x3b   :  { %447 = vmatpush1.bf16.msra.mxu1 %v446_v44  ;;  %385 = vmatprep.subr.bf16.mxu0 %v384_v45  ;;  %p464_p3 = por %p463_p2, %p462_p1 }
  0x3c   :  { %449 = vmatprep.subr.bf16.mxu1 %v448_v49 }
  0x3d   :  { %p465_p4 = pnand %p464_p3, %p458_p0 }
  0x3e   :  { %387 = vmatpush1.bf16.msra.mxu0 %v386_v55 }
  0x3f   :  { %451 = vmatpush1.bf16.msra.mxu1 %v450_v56  ;;  %389 = vmatprep.subr.bf16.mxu0 %v388_v57 }
  0x40   :  { %453 = vmatprep.subr.bf16.mxu1 %v452_v60 }
  0x42   :  { %391 = vmatpush1.bf16.msra.mxu0 %v390_v63 }
  0x43   :  { %455 = vmatpush1.bf16.msra.mxu1 %v454_v0 }
  0x45   :  { %232 = vmatmul.mubr.f32.vlgmr.msra.gmra.mrb[0].mxu0 %v15_v1 }
  0x46   :  { %303 = vmatmul.mubr.f32.vlgmr.msra.gmra.mrb[0].mxu1 %v15_v1 }
 0x118   :  { %v233_v13 = vpop.f32.mrb[0].mxu0 }
 0x119   :  { %v234_v14 = vadd.f32 %v233_v13, %v150_v9  ;;  %v304_v15 = vpop.f32.mrb[0].mxu1  ;;  %v235_v16 = vpop.f32.mrb[1].mxu0 }
 0x11a   :  { %v305_v17 = vadd.f32 %v304_v15, %v158_v10  ;;  %v236_v18 = vadd.f32 %v235_v16, %v154_v11  ;;  %v306_v19 = vpop.f32.mrb[1].mxu1 }
 0x11b   :  { %309 = vst [vmem:[#allocation2] sm:$0xff] %v234_v14  ;;  %v307_v20 = vadd.f32 %v306_v19, %v162_v12 }
 0x11c   :  { %311 = vst [vmem:[#allocation2 + $0x10] sm:$0xff] %v305_v17  ;;  %310 = vst [vmem:[#allocation2 + $0x8] sm:$0xff] %v236_v18 }
 0x11d   :  { %313 = vst.msk [vmem:[#allocation2 + $0x18] sm:$0xff] %vm312_vm0, %v307_v20 }
 0x11e   :  { %468 = shalt.err (!%p465_p4)
}
 0x11f   :  { %s469_s6 = scalar_lea.hbm %s910_s3, 512 }
 0x120   :  { %p470_p5 = scmp.ne.s32.totalorder %s910_s3, %s469_s6  ;;  %p473_p6 = scmp.lt.u32.totalorder %s469_s6, %s910_s3 }
 0x122   :  { %p475_p7 = pnand %p473_p6, %p470_p5 }
 0x124   :  { %478 = shalt.err (!%p475_p7)
}
 0x125   :  { %323 = dma.vmem_to_hbm [thread:$0]  %s321_s0, 512, %s910_s3, [#allocation3]  }
 0x126   :  { %479 = dma.done.wait [#allocation3], 512  }
 0x127   :  { %480 = vsyncadd [#allocation3], 4294966784 }
 0x128   :  { %327 = vsyncpa [#allocation3], 1 }

</bundles_post_ra>
